<compile_context>
chip_gen: v7x
topology: tpu7x:2x2x1
jax: 0.10.0
libtpu: 0.0.40
codegen_flags: <defaults>
</compile_context>

<pallas_src>
import functools

import jax
import jax.numpy as jnp
from jax import lax
from jax.experimental import pallas as pl
from jax.experimental.pallas import tpu as pltpu


def _pinball(x, q):
    # == x*(x>=0)*q + (-x)*(x<0)*(1-q), rewritten as a max of two scalings.
    return jnp.maximum(q * x, (q - 1.0) * x)


def _make_kernel(q: float, B: int, TM: int, Bp: int):
    q = float(q)

    def kernel(offs_ref, logit_ref, target_ref, t0_ref, t1_ref, out_ref):
        off_in = offs_ref[0]     # 1 - min(logit)   (f32 scalar from SMEM)
        off_out = offs_ref[1]    # -1 - max(logit)

        logit = logit_ref[...].astype(jnp.float32)     # (TM, C)
        target = target_ref[...].astype(jnp.float32)   # (TM, C)

        # Per-row reductions using the *global* offsets.
        out_in = jnp.max((logit + off_in) * (1.0 - target), axis=1,
                         keepdims=True) - off_in                      # (TM, 1)
        out_out = jnp.min((logit + off_out) * target, axis=1,
                          keepdims=True) - off_out                    # (TM, 1)

        t0 = t0_ref[...]   # (1, Bp) f32, lane-padded copy of t[:, 0]
        t1 = t1_ref[...]   # (1, Bp) f32, lane-padded copy of t[:, 1]

        # Broadcast phase for this row tile, reduced immediately.
        loss = _pinball(-out_in - t0, q) + _pinball(out_out - t1, q)  # (TM, Bp)

        # Mask padded lanes / rows (static predicates: no-op when shapes fit).
        mask = None
        if Bp != B:
            col_ids = lax.broadcasted_iota(jnp.int32, (1, Bp), 1)
            mask = col_ids < B
        if B % TM != 0:
            row_ids = (pl.program_id(0) * TM
                       + lax.broadcasted_iota(jnp.int32, (TM, 1), 0))
            rmask = row_ids < B
            mask = rmask if mask is None else (mask & rmask)
        if mask is not None:
            loss = jnp.where(mask, loss, 0.0)

        partial = jnp.sum(loss, keepdims=True)                        # (1, 1)
        # Lane-dense partial-sum block (unmasked vst); wrapper reads [0, 0].
        out_ref[...] = jnp.broadcast_to(partial, (8, 128))

    return kernel


def _row_tile_cap(C: int, Bp: int) -> int:
    # Keep double-buffered (TM, C) input tiles (native + f32 copies) plus the
    # (TM, Bp) broadcast temporaries well under the default scoped-VMEM limit
    # (16 MiB v5e, 32 MiB v6e/v7x, 64 MiB physical per-TC on v7x).
    budget = 8 * 1024 * 1024
    bytes_per_row = 4 * (6 * C + 2 * Bp)
    cap = budget // max(bytes_per_row, 1)
    return max(8, min(512, (cap // 8) * 8))


def quantile_loss_pallas(logit, target, t, *, q, reduction="mean",
                         max_rows_per_tile=None):
    assert logit.ndim == 2, f"Expected 2 dimensions (got {logit.ndim})"
    B, C = logit.shape

    # Hoisted global min/max (single cheap XLA pass); offsets fed as scalars.
    lmin = jnp.min(logit).astype(jnp.float32)
    lmax = jnp.max(logit).astype(jnp.float32)
    offs = jnp.stack([1.0 - lmin, -1.0 - lmax])                 # (2,) f32

    # Lane-padded row vectors of the two target offsets (tiny arrays).
    Bp = max(128, ((B + 127) // 128) * 128)
    t32 = t.astype(jnp.float32)
    t0 = jnp.zeros((1, Bp), jnp.float32).at[0, :B].set(t32[:, 0])
    t1 = jnp.zeros((1, Bp), jnp.float32).at[0, :B].set(t32[:, 1])

    cap = _row_tile_cap(C, Bp)
    if max_rows_per_tile is not None:
        cap = min(cap, max(8, (int(max_rows_per_tile) // 8) * 8))
    TM = B if B <= cap else cap
    num_tiles = pl.cdiv(B, TM)
    # TODO(synk): for very large C a second (arbitrary) grid axis over C with a
    # running row-max/min accumulator would be needed; full-C row tiles here.

    partials = pl.pallas_call(
        _make_kernel(q, B, TM, Bp),
        grid=(num_tiles,),
        in_specs=[
            pl.BlockSpec(memory_space=pltpu.MemorySpace.SMEM),   # offsets (2,)
            pl.BlockSpec((TM, C), lambda i: (i, 0)),             # logit tile
            pl.BlockSpec((TM, C), lambda i: (i, 0)),             # target tile
            pl.BlockSpec((1, Bp), lambda i: (0, 0)),             # t[:, 0] row
            pl.BlockSpec((1, Bp), lambda i: (0, 0)),             # t[:, 1] row
        ],
        out_specs=pl.BlockSpec((8, 128), lambda i: (i, 0)),
        out_shape=jax.ShapeDtypeStruct((num_tiles * 8, 128), jnp.float32),
        compiler_params=pltpu.CompilerParams(
            dimension_semantics=("parallel",)),
    )(offs, logit, target, t0, t1)

    per_tile = partials.reshape(num_tiles, 8, 128)[:, 0, 0]
    total = jnp.sum(per_tile)

    if reduction == "mean":
        return total / float(B * B)
    elif reduction == "sum":
        return total
    else:
        # TODO(synk): reduction='none' would need the full (B, B) loss matrix.
        raise ValueError("only 'mean'/'sum' reductions supported")


def _quantile_noreduction_ref(x, alpha):
    # Original PyTorch formula (kept in the reference for faithful checking).
    return x * (x >= 0) * alpha + (-x) * (x < 0) * (1.0 - alpha)


def quantile_loss_ref(logit, target, t, *, q, reduction="mean"):
    """Pure-JAX reference mirroring the PyTorch forward."""
    logit = logit.astype(jnp.float32)
    target = target.astype(jnp.float32)
    t = t.astype(jnp.float32)
    offset = 1.0 - jnp.min(logit)
    output = jnp.max((logit + offset) * (1.0 - target), axis=1, keepdims=True) - offset
    loss_in = _quantile_noreduction_ref(-output - t[:, 0][None, :], q)
    offset = -1.0 - jnp.max(logit)
    output = jnp.min((logit + offset) * target, axis=1, keepdims=True) - offset
    loss_out = _quantile_noreduction_ref(output - t[:, 1][None, :], q)
    total = loss_in + loss_out
    if reduction == "mean":
        return jnp.mean(total)
    return jnp.sum(total)


if __name__ == "__main__":
    q = 0.7
    key = jax.random.PRNGKey(0)
    k1, k2, k3, k4, k5, k6 = jax.random.split(key, 6)

    # Case 1: single row tile (B=8, C=128).
    B, C = 8, 128
    logit = jax.random.normal(k1, (B, C), dtype=jnp.float32)
    target = jax.random.bernoulli(k2, p=0.25, shape=(B, C)).astype(jnp.float32)
    t = jax.random.normal(k3, (B, 2), dtype=jnp.float32)

    loss_fn = jax.jit(functools.partial(quantile_loss_pallas, q=q, reduction="mean"))
    loss = loss_fn(logit, target, t)
    jax.block_until_ready(loss)
    ref = quantile_loss_ref(logit, target, t, q=q, reduction="mean")
    assert jnp.allclose(loss, ref, atol=1e-5, rtol=1e-5), (loss, ref)

    # Case 2: multi-tile grid (exercises the "parallel" row-tile axis + partials).
    B2, C2 = 16, 64
    logit2 = jax.random.normal(k4, (B2, C2), dtype=jnp.float32)
    target2 = jax.random.bernoulli(k5, p=0.25, shape=(B2, C2)).astype(jnp.float32)
    t2 = jax.random.normal(k6, (B2, 2), dtype=jnp.float32)

    loss_fn2 = jax.jit(functools.partial(quantile_loss_pallas, q=q,
                                         reduction="mean", max_rows_per_tile=8))
    loss2 = loss_fn2(logit2, target2, t2)
    jax.block_until_ready(loss2)
    ref2 = quantile_loss_ref(logit2, target2, t2, q=q, reduction="mean")
    assert jnp.allclose(loss2, ref2, atol=1e-5, rtol=1e-5), (loss2, ref2)

    print("KERNEL_OK")
</pallas_src>

<mosaic_0001>
module attributes {stable_mosaic.version = 11 : i64} {
  func.func @kernel(%arg0: i32, %arg1: memref<2xf32, #tpu.memory_space<smem>>, %arg2: memref<8x128xf32, #tpu.memory_space<vmem>>, %arg3: memref<8x128xf32, #tpu.memory_space<vmem>>, %arg4: memref<1x128xf32, #tpu.memory_space<vmem>>, %arg5: memref<1x128xf32, #tpu.memory_space<vmem>>, %arg6: memref<8x128xf32, #tpu.memory_space<vmem>>) attributes {dimension_semantics = [#tpu.dimension_semantics<parallel>], iteration_bounds = array<i64: 1>, scalar_prefetch = 0 : i64, scratch_operands = 0 : i64, tpu.core_type = #tpu.core_type<tc>, window_params = [{transform_indices = @transform_0, window_bounds = array<i64: 2>}, {transform_indices = @transform_1, window_bounds = array<i64: 8, 128>}, {transform_indices = @transform_2, window_bounds = array<i64: 8, 128>}, {pipeline_mode = #tpu.pipeline_mode<synchronous>, transform_indices = @transform_3, window_bounds = array<i64: 1, 128>}, {pipeline_mode = #tpu.pipeline_mode<synchronous>, transform_indices = @transform_4, window_bounds = array<i64: 1, 128>}, {transform_indices = @transform_5, window_bounds = array<i64: 8, 128>}]} {
    %c0 = arith.constant 0 : index
    %0 = memref.load %arg1[%c0] : memref<2xf32, #tpu.memory_space<smem>>
    %c1 = arith.constant 1 : index
    %1 = memref.load %arg1[%c1] : memref<2xf32, #tpu.memory_space<smem>>
    %c0_0 = arith.constant 0 : index
    %c0_1 = arith.constant 0 : index
    %2 = vector.load %arg2[%c0_0, %c0_1] : memref<8x128xf32, #tpu.memory_space<vmem>>, vector<8x128xf32>
    %c0_2 = arith.constant 0 : index
    %c0_3 = arith.constant 0 : index
    %3 = vector.load %arg3[%c0_2, %c0_3] : memref<8x128xf32, #tpu.memory_space<vmem>>, vector<8x128xf32>
    %4 = vector.broadcast %0 : f32 to vector<8x128xf32>
    %5 = arith.addf %2, %4 : vector<8x128xf32>
    %cst = arith.constant 1.000000e+00 : f32
    %6 = vector.broadcast %cst : f32 to vector<8x128xf32>
    %7 = arith.subf %6, %3 : vector<8x128xf32>
    %8 = arith.mulf %5, %7 : vector<8x128xf32>
    %cst_4 = arith.constant dense<0xFF800000> : vector<8xf32>
    %9 = vector.multi_reduction <maximumf>, %8, %cst_4 [1] : vector<8x128xf32> to vector<8xf32>
    %10 = vector.shape_cast %9 : vector<8xf32> to vector<8x1xf32>
    %11 = vector.broadcast %0 : f32 to vector<8x1xf32>
    %12 = arith.subf %10, %11 : vector<8x1xf32>
    %13 = vector.broadcast %1 : f32 to vector<8x128xf32>
    %14 = arith.addf %2, %13 : vector<8x128xf32>
    %15 = arith.mulf %14, %3 : vector<8x128xf32>
    %cst_5 = arith.constant dense<0x7F800000> : vector<8xf32>
    %16 = vector.multi_reduction <minimumf>, %15, %cst_5 [1] : vector<8x128xf32> to vector<8xf32>
    %17 = vector.shape_cast %16 : vector<8xf32> to vector<8x1xf32>
    %18 = vector.broadcast %1 : f32 to vector<8x1xf32>
    %19 = arith.subf %17, %18 : vector<8x1xf32>
    %c0_6 = arith.constant 0 : index
    %c0_7 = arith.constant 0 : index
    %20 = vector.load %arg4[%c0_6, %c0_7] : memref<1x128xf32, #tpu.memory_space<vmem>>, vector<1x128xf32>
    %c0_8 = arith.constant 0 : index
    %c0_9 = arith.constant 0 : index
    %21 = vector.load %arg5[%c0_8, %c0_9] : memref<1x128xf32, #tpu.memory_space<vmem>>, vector<1x128xf32>
    %cst_10 = arith.constant 0.000000e+00 : f32
    %22 = vector.broadcast %cst_10 : f32 to vector<8x1xf32>
    %23 = arith.subf %22, %12 : vector<8x1xf32>
    %24 = vector.broadcast %23 : vector<8x1xf32> to vector<8x128xf32>
    %25 = vector.broadcast %20 : vector<1x128xf32> to vector<8x128xf32>
    %26 = arith.subf %24, %25 : vector<8x128xf32>
    %cst_11 = arith.constant 0.699999988 : f32
    %27 = vector.broadcast %cst_11 : f32 to vector<8x128xf32>
    %28 = arith.mulf %27, %26 : vector<8x128xf32>
    %cst_12 = arith.constant -3.000000e-01 : f32
    %29 = vector.broadcast %cst_12 : f32 to vector<8x128xf32>
    %30 = arith.mulf %29, %26 : vector<8x128xf32>
    %31 = arith.maximumf %28, %30 : vector<8x128xf32>
    %32 = vector.broadcast %19 : vector<8x1xf32> to vector<8x128xf32>
    %33 = vector.broadcast %21 : vector<1x128xf32> to vector<8x128xf32>
    %34 = arith.subf %32, %33 : vector<8x128xf32>
    %cst_13 = arith.constant 0.699999988 : f32
    %35 = vector.broadcast %cst_13 : f32 to vector<8x128xf32>
    %36 = arith.mulf %35, %34 : vector<8x128xf32>
    %cst_14 = arith.constant -3.000000e-01 : f32
    %37 = vector.broadcast %cst_14 : f32 to vector<8x128xf32>
    %38 = arith.mulf %37, %34 : vector<8x128xf32>
    %39 = arith.maximumf %36, %38 : vector<8x128xf32>
    %40 = arith.addf %31, %39 : vector<8x128xf32>
    %41 = tpu.iota {dimensions = array<i32: 1>} : vector<1x128xi32>
    %c8_i32 = arith.constant 8 : i32
    %42 = vector.broadcast %c8_i32 : i32 to vector<1x128xi32>
    %43 = arith.cmpi slt, %41, %42 : vector<1x128xi32>
    %cst_15 = arith.constant 0.000000e+00 : f32
    %44 = vector.shape_cast %43 : vector<1x128xi1> to vector<1x128xi1>
    %45 = vector.broadcast %44 : vector<1x128xi1> to vector<8x128xi1>
    %46 = vector.broadcast %cst_15 : f32 to vector<8x128xf32>
    %47 = arith.select %45, %40, %46 : vector<8x128xi1>, vector<8x128xf32>
    %48 = vector.shape_cast %47 : vector<8x128xf32> to vector<1x8x128xf32>
    %cst_16 = arith.constant dense<0.000000e+00> : vector<1xf32>
    %49 = vector.multi_reduction <add>, %48, %cst_16 [1, 2] : vector<1x8x128xf32> to vector<1xf32>
    %50 = vector.shape_cast %49 : vector<1xf32> to vector<1x1x1xf32>
    %51 = vector.extract %50[0, 0, 0] : f32 from vector<1x1x1xf32>
    %52 = vector.broadcast %51 : f32 to vector<1x1xf32>
    %53 = vector.shape_cast %52 : vector<1x1xf32> to vector<1x1xf32>
    %54 = vector.broadcast %53 : vector<1x1xf32> to vector<8x128xf32>
    %c0_17 = arith.constant 0 : index
    %c0_18 = arith.constant 0 : index
    %55 = vector.load %arg6[%c0_17, %c0_18] : memref<8x128xf32, #tpu.memory_space<vmem>>, vector<8x128xf32>
    tpu.vector_store %arg6[%c0_17, %c0_18], %54 {strides = array<i32>} : memref<8x128xf32, #tpu.memory_space<vmem>>, vector<8x128xf32>,
    return
  }
  func.func @transform_0(%arg0: i32) -> i32 {
    %c0_i32 = arith.constant 0 : i32
    %c0_i32_0 = arith.constant 0 : i32
    return %c0_i32 : i32
  }
  func.func @transform_1(%arg0: i32) -> (i32, i32) {
    %c0_i32 = arith.constant 0 : i32
    %c0_i32_0 = arith.constant 0 : i32
    return %arg0, %c0_i32 : i32, i32
  }
  func.func @transform_2(%arg0: i32) -> (i32, i32) {
    %c0_i32 = arith.constant 0 : i32
    %c0_i32_0 = arith.constant 0 : i32
    return %arg0, %c0_i32 : i32, i32
  }
  func.func @transform_3(%arg0: i32) -> (i32, i32) {
    %c0_i32 = arith.constant 0 : i32
    %c0_i32_0 = arith.constant 0 : i32
    %c0_i32_1 = arith.constant 0 : i32
    return %c0_i32, %c0_i32_0 : i32, i32
  }
  func.func @transform_4(%arg0: i32) -> (i32, i32) {
    %c0_i32 = arith.constant 0 : i32
    %c0_i32_0 = arith.constant 0 : i32
    %c0_i32_1 = arith.constant 0 : i32
    return %c0_i32, %c0_i32_0 : i32, i32
  }
  func.func @transform_5(%arg0: i32) -> (i32, i32) {
    %c0_i32 = arith.constant 0 : i32
    %c0_i32_0 = arith.constant 0 : i32
    return %arg0, %c0_i32 : i32, i32
  }
}

</mosaic_0001>

<bundles_post_ra>
// kernel: quantile_loss_pallas.1
= control target key start
LH: loop header
LB: loop body
LE: loop exit
PB: predicated region body
PF: predicated region fallthrough
CT: control target
= control target key end

     0   :  { %10 = vsyncpa [#allocation3], 0  ;;  %s165_s0 = inlined_call_operand.vmem [shape: f32[2], index: 0, kind: input, shape index: {}]   ;;  %s166_s1 = inlined_call_operand.vmem [shape: f32[8,128], index: 1, kind: input, shape index: {}]   ;;  %s167_s2 = inlined_call_operand.vmem [shape: f32[8,128], index: 2, kind: input, shape index: {}]   ;;  %s168_s3 = inlined_call_operand.vmem [shape: f32[1,128], index: 3, kind: input, shape index: {}]   ;;  %s169_s4 = inlined_call_operand.vmem [shape: f32[1,128], index: 4, kind: input, shape index: {}]   ;;  %s170_s5 = inlined_call_operand.vmem [shape: f32[8,128], index: 5, kind: output, shape index: {}]  }
   0x1   :  { %s17_s20 = sshll.u32 %s165_s0, 4  ;;  %s18_s20 = int_to_ptr.vmem [resolvable:$true] %s17_s20 }
   0x2   :  { %s102_s21 = scalar_lea.vmem %s18_s20, 16  ;;  %p107_p1 = scmp.lt.s32.totalorder %s18_s20, %s18_s20 }
   0x3   :  { %p103_p0 = scmp.ne.s32.totalorder %s18_s20, %s102_s21  ;;  %p108_p2 = scmp.lt.s32.totalorder %s102_s21, %s102_s21 }
   0x5   :  { %p109_p3 = por %p108_p2, %p107_p1 }
   0x7   :  { %p110_p4 = pnand %p109_p3, %p103_p0 }
   0x9   :  { %113 = shalt.err (!%p110_p4)
}
   0xa   :  { %s116_s22 = smov [#allocation2]  }
   0xb   :  { %20 = dma.vmem_to_smem %s18_s20, 16, %s116_s22, [#allocation3]  }
   0xc   :  { %114 = dma.done.wait [#allocation3], 16  }
   0xd   :  { %115 = vsyncadd [#allocation3], 4294967280 }
   0xe   :  { %32 = sfence }
   0xf   :  { %s33_s23 = sld [smem:[#allocation2]]  ;;  %s96_s24 = sld [smem:[#allocation2 + $0x1]]  ;;  %v36_v0 = vld [vmem:[%s167_s2] sm:$0xff]  ;;  %v74_v15 = vlaneseq }
  0x10   :  { %v35_v1 = vld [vmem:[%s166_s1] sm:$0xff]  ;;  %v39_v2 = vsub.f32 1.0, %v36_v0 }
  0x11   :  { %v97_v11 = vld [vmem:[%s168_s3] ss:$0 sm:$0xff]  ;;  %v75_v21 = vand.u32 127, %v74_v15 }
  0x12   :  { %v98_v13 = vld [vmem:[%s169_s4] ss:$0 sm:$0xff] }
  0x13   :  { %vm76_vm0 = vcmp.lt.s32.totalorder %v75_v21, 8 }
  0x15   :  { %v37_v3 = vstv %s33_s23  ;;  %v44_v4 = vstv %s96_s24 }
  0x16   :  { %v38_v5 = vadd.f32 %v37_v3, %v35_v1  ;;  %v45_v6 = vadd.f32 %v44_v4, %v35_v1 }
  0x18   :  { %v40_v7 = vmul.f32 %v39_v2, %v38_v5  ;;  %v46_v8 = vmul.f32 %v45_v6, %v36_v0 }
  0x1a   :  { %41 = vmax.xlane.f32.xlu0 %v40_v7 }
  0x1e   :  { %47 = vmin.xlane.f32.xlu0 %v46_v8 }
  0xa7   :  { %v42_v9 = vpop.xlane.xlu0 %41 }
  0xa8   :  { %v43_v10 = vsub.f32 %v42_v9, %v37_v3 }
  0xaa   :  { %v52_v12 = vsub.f32 0.0, %v43_v10 }
  0xab   :  { %v48_v14 = vpop.xlane.xlu0 %47 }
  0xac   :  { %v59_v16 = vsub.f32 %v52_v12, %v97_v11  ;;  %v49_v17 = vsub.f32 %v48_v14, %v44_v4 }
  0xae   :  { %v60_v18 = vmul.f32 0.7, %v59_v16  ;;  %v61_v19 = vmul.f32 -0.3, %v59_v16  ;;  %v69_v20 = vsub.f32 %v49_v17, %v98_v13 }
  0xb0   :  { %v70_v22 = vmul.f32 0.7, %v69_v20  ;;  %v71_v23 = vmul.f32 -0.3, %v69_v20  ;;  %v62_v24 = vmax.f32 %v60_v18, %v61_v19 }
  0xb2   :  { %v72_v25 = vmax.f32 %v70_v22, %v71_v23 }
  0xb4   :  { %v73_v26 = vadd.f32 %v72_v25, %v62_v24 }
  0xb6   :  { %v79_v27 = vsel %vm76_vm0, %v73_v26, 0.0 }
  0xb7   :  { %80 = vadd.xlane.f32.xlu1 %v79_v27 }
 0x144   :  { %v81_v28 = vpop.xlane.xlu1 %80 }
 0x145   :  { %v82_v29 = vrot.slane %v81_v28, 4 }
 0x147   :  { %v83_v30 = vadd.f32 %v82_v29, %v81_v28 }
 0x149   :  { %v84_v31 = vrot.slane %v83_v30, 2 }
 0x14b   :  { %v85_v32 = vadd.f32 %v84_v31, %v83_v30 }
 0x14d   :  { %v86_v33 = vrot.slane %v85_v32, 1 }
 0x14f   :  { %v87_v34 = vadd.f32 %v86_v33, %v85_v32 }
 0x151   :  { %99 = vpush %v87_v34 }
 0x182   :  { %s100_s1 = spop %99 }
 0x183   :  { %v89_v35 = vstv %s100_s1 }
 0x184   :  { %90 = vst [vmem:[%s170_s5] sm:$0xff] %v89_v35 }
 0x185   :  { %95 = vsyncpa [#allocation3], 1 }

</bundles_post_ra>
